<compile_context>
chip_gen: v6e
topology: v6e:2x2x1
jax: 0.10.0
libtpu: 0.0.40
codegen_flags: <defaults>
</compile_context>

<pallas_src>
import math
import functools

import jax
import jax.numpy as jnp
from jax.experimental import pallas as pl
from jax.experimental.pallas import tpu as pltpu


def _round_up(x: int, m: int) -> int:
    return ((x + m - 1) // m) * m


def _balanced_tile(total: int, cap: int, align: int) -> int:
    """Largest tile <= cap (aligned) that spreads `total` evenly over tiles."""
    total_aligned = _round_up(total, align)
    if total_aligned <= cap:
        return total_aligned
    n_tiles = pl.cdiv(total_aligned, cap)
    return _round_up(pl.cdiv(total, n_tiles), align)


# ----------------------------------------------------------------------------
# Kernels
# ----------------------------------------------------------------------------
def _proj_kernel_bias(x_ref, w_ref, b_ref, o_ref):
    """Full-K tile with bias. x:(tm,K)  w:(tn,K) [torch layout]  b:(1,tn)."""
    acc = jax.lax.dot_general(
        x_ref[...], w_ref[...],
        dimension_numbers=(((1,), (1,)), ((), ())),   # x @ W^T
        preferred_element_type=jnp.float32,
    )
    o_ref[...] = (acc + b_ref[...].astype(jnp.float32)).astype(o_ref.dtype)


def _proj_kernel_nobias(x_ref, w_ref, o_ref):
    """Full-K tile, no bias."""
    acc = jax.lax.dot_general(
        x_ref[...], w_ref[...],
        dimension_numbers=(((1,), (1,)), ((), ())),
        preferred_element_type=jnp.float32,
    )
    o_ref[...] = acc.astype(o_ref.dtype)


def _proj_kernel_ktiled_bias(x_ref, w_ref, b_ref, o_ref, acc_ref):
    """K-tiled variant with bias: f32 VMEM accumulator, bias at finalize."""
    k = pl.program_id(2)

    @pl.when(k == 0)
    def _():
        acc_ref[...] = jnp.zeros_like(acc_ref)

    acc_ref[...] += jax.lax.dot_general(
        x_ref[...], w_ref[...],
        dimension_numbers=(((1,), (1,)), ((), ())),   # partial-K x @ W^T
        preferred_element_type=jnp.float32,
    )

    @pl.when(k == pl.num_programs(2) - 1)
    def _():
        o_ref[...] = (acc_ref[...] + b_ref[...].astype(jnp.float32)).astype(o_ref.dtype)


def _proj_kernel_ktiled_nobias(x_ref, w_ref, o_ref, acc_ref):
    """K-tiled variant, no bias."""
    k = pl.program_id(2)

    @pl.when(k == 0)
    def _():
        acc_ref[...] = jnp.zeros_like(acc_ref)

    acc_ref[...] += jax.lax.dot_general(
        x_ref[...], w_ref[...],
        dimension_numbers=(((1,), (1,)), ((), ())),
        preferred_element_type=jnp.float32,
    )

    @pl.when(k == pl.num_programs(2) - 1)
    def _():
        o_ref[...] = acc_ref[...].astype(o_ref.dtype)


# ----------------------------------------------------------------------------
# Wrapper
# ----------------------------------------------------------------------------
@functools.partial(jax.jit, static_argnames=("heads", "d_k"))
def prepare_for_mha(x, weight, bias, *, heads: int, d_k: int):
    """Pallas equivalent of PrepareForMultiHeadAttention.forward.

    x:      (*head_shape, d_model)
    weight: (heads*d_k, d_model)   -- PyTorch nn.Linear layout (NOT transposed)
    bias:   (heads*d_k,) or None
    returns (*head_shape, heads, d_k)
    """
    head_shape = x.shape[:-1]
    d_model = x.shape[-1]
    n_out = heads * d_k
    m = math.prod(head_shape) if head_shape else 1
    has_bias = bias is not None

    x2d = x.reshape(m, d_model)

    # ---- tile selection (static, derived from shapes) ----------------------
    tm = _balanced_tile(m, 256, 8)            # sublane-aligned M tile
    tn = _balanced_tile(n_out, 256, 128)      # lane-dense N tile (>=128)

    k_aligned = _round_up(d_model, 128)
    K_FULL_MAX = 2048                         # keep whole K per tile below this
    tile_k_reduction = k_aligned > K_FULL_MAX
    tk = _balanced_tile(d_model, 512, 128) if tile_k_reduction else k_aligned

    m_pad = _round_up(m, tm)
    n_pad = _round_up(n_out, tn)
    k_pad = _round_up(d_model, tk)

    # ---- pad operands so every tile is (8,128)-aligned ---------------------
    x_p = x2d
    if (m_pad, k_pad) != (m, d_model):
        x_p = jnp.pad(x2d, ((0, m_pad - m), (0, k_pad - d_model)))
    w_p = weight
    if (n_pad, k_pad) != (n_out, d_model):
        w_p = jnp.pad(weight, ((0, n_pad - n_out), (0, k_pad - d_model)))
    if has_bias:
        b_p = bias
        if n_pad != n_out:
            b_p = jnp.pad(bias, (0, n_pad - n_out))
        b_p = b_p.reshape(1, n_pad)

    nm, nn_, nk = m_pad // tm, n_pad // tn, k_pad // tk
    out_shape = jax.ShapeDtypeStruct((m_pad, n_pad), x.dtype)

    itemsize = jnp.dtype(x.dtype).itemsize
    cost = pl.CostEstimate(
        flops=2 * m_pad * n_pad * k_pad,
        transcendentals=0,
        bytes_accessed=(m_pad * k_pad + n_pad * k_pad + m_pad * n_pad) * itemsize,
    )

    if not tile_k_reduction:
        # 2-D grid: one dot per (i, j); both axes parallel (megacore-friendly).
        in_specs = [
            pl.BlockSpec((tm, tk), lambda i, j: (i, 0)),
            pl.BlockSpec((tn, tk), lambda i, j: (j, 0)),
        ]
        operands = [x_p, w_p]
        if has_bias:
            in_specs.append(pl.BlockSpec((1, tn), lambda i, j: (0, j)))
            operands.append(b_p)
        out = pl.pallas_call(
            _proj_kernel_bias if has_bias else _proj_kernel_nobias,
            out_shape=out_shape,
            grid_spec=pltpu.PrefetchScalarGridSpec(
                num_scalar_prefetch=0,
                grid=(nm, nn_),
                in_specs=in_specs,
                out_specs=pl.BlockSpec((tm, tn), lambda i, j: (i, j)),
            ),
            compiler_params=pltpu.CompilerParams(
                dimension_semantics=("parallel", "parallel"),
            ),
            cost_estimate=cost,
        )(*operands)
    else:
        # 3-D grid with K reduction: f32 accumulator scratch, bias at finalize.
        in_specs = [
            pl.BlockSpec((tm, tk), lambda i, j, k: (i, k)),
            pl.BlockSpec((tn, tk), lambda i, j, k: (j, k)),
        ]
        operands = [x_p, w_p]
        if has_bias:
            in_specs.append(pl.BlockSpec((1, tn), lambda i, j, k: (0, j)))
            operands.append(b_p)
        out = pl.pallas_call(
            _proj_kernel_ktiled_bias if has_bias else _proj_kernel_ktiled_nobias,
            out_shape=out_shape,
            grid_spec=pltpu.PrefetchScalarGridSpec(
                num_scalar_prefetch=0,
                grid=(nm, nn_, nk),
                in_specs=in_specs,
                out_specs=pl.BlockSpec((tm, tn), lambda i, j, k: (i, j)),
                scratch_shapes=[pltpu.VMEM((tm, tn), jnp.float32)],
            ),
            compiler_params=pltpu.CompilerParams(
                dimension_semantics=("parallel", "parallel", "arbitrary"),
            ),
            cost_estimate=cost,
        )(*operands)

    out = out[:m, :n_out]
    return out.reshape(*head_shape, heads, d_k)


# ----------------------------------------------------------------------------
# Self-test
# ----------------------------------------------------------------------------
if __name__ == "__main__":
    # Small shapes consistent with the module: x = (seq, batch, d_model).
    seq, batch, d_model = 8, 2, 32
    heads, d_k = 4, 8

    key = jax.random.PRNGKey(0)
    kx, kw, kb = jax.random.split(key, 3)

    # nn.Linear-style init: uniform(-1/sqrt(fan_in), 1/sqrt(fan_in)).
    bound = 1.0 / math.sqrt(d_model)
    weight = jax.random.uniform(
        kw, (heads * d_k, d_model), jnp.float32, minval=-bound, maxval=bound
    )
    bias = jax.random.uniform(
        kb, (heads * d_k,), jnp.float32, minval=-bound, maxval=bound
    )
    x = jax.random.normal(kx, (seq, batch, d_model), jnp.float32)

    # With bias.
    out = prepare_for_mha(x, weight, bias, heads=heads, d_k=d_k)
    out = jax.block_until_ready(out)
    ref = (x.reshape(-1, d_model) @ weight.T + bias).reshape(seq, batch, heads, d_k)
    assert out.shape == (seq, batch, heads, d_k), out.shape
    assert jnp.allclose(out, ref, atol=1e-5, rtol=1e-5)

    # Without bias.
    out_nb = prepare_for_mha(x, weight, None, heads=heads, d_k=d_k)
    out_nb = jax.block_until_ready(out_nb)
    ref_nb = (x.reshape(-1, d_model) @ weight.T).reshape(seq, batch, heads, d_k)
    assert jnp.allclose(out_nb, ref_nb, atol=1e-5, rtol=1e-5)

    print("KERNEL_OK")
</pallas_src>

<mosaic_0001>
module attributes {stable_mosaic.version = 11 : i64} {
  func.func @_proj_kernel_bias(%arg0: i32, %arg1: i32, %arg2: memref<16x128xf32, #tpu.memory_space<vmem>>, %arg3: memref<128x128xf32, #tpu.memory_space<vmem>>, %arg4: memref<1x128xf32, #tpu.memory_space<vmem>>, %arg5: memref<16x128xf32, #tpu.memory_space<vmem>>) attributes {dimension_semantics = [#tpu.dimension_semantics<parallel>, #tpu.dimension_semantics<parallel>], iteration_bounds = array<i64: 1, 1>, scalar_prefetch = 0 : i64, scratch_operands = 0 : i64, tpu.core_type = #tpu.core_type<tc>, window_params = [{transform_indices = @transform_0, window_bounds = array<i64: 16, 128>}, {transform_indices = @transform_1, window_bounds = array<i64: 128, 128>}, {transform_indices = @transform_2, window_bounds = array<i64: 1, 128>}, {transform_indices = @transform_3, window_bounds = array<i64: 16, 128>}]} {
    %c0 = arith.constant 0 : index
    %c0_0 = arith.constant 0 : index
    %0 = vector.load %arg2[%c0, %c0_0] : memref<16x128xf32, #tpu.memory_space<vmem>>, vector<16x128xf32>
    %c0_1 = arith.constant 0 : index
    %c0_2 = arith.constant 0 : index
    %1 = vector.load %arg3[%c0_1, %c0_2] : memref<128x128xf32, #tpu.memory_space<vmem>>, vector<128x128xf32>
    %cst = arith.constant dense<0.000000e+00> : vector<16x128xf32>
    %2 = tpu.matmul %0, %1, %cst {dimension_numbers = #tpu.dot_dimension_numbers<[1], [1], [0], [0], [0, 0, 1, 0], [], []>} : vector<16x128xf32>, vector<128x128xf32>, vector<16x128xf32> -> vector<16x128xf32>
    %c0_3 = arith.constant 0 : index
    %c0_4 = arith.constant 0 : index
    %3 = vector.load %arg4[%c0_3, %c0_4] : memref<1x128xf32, #tpu.memory_space<vmem>>, vector<1x128xf32>
    %4 = vector.broadcast %3 : vector<1x128xf32> to vector<16x128xf32>
    %5 = arith.addf %2, %4 : vector<16x128xf32>
    %c0_5 = arith.constant 0 : index
    %c0_6 = arith.constant 0 : index
    %6 = vector.load %arg5[%c0_5, %c0_6] : memref<16x128xf32, #tpu.memory_space<vmem>>, vector<16x128xf32>
    tpu.vector_store %arg5[%c0_5, %c0_6], %5 {strides = array<i32>} : memref<16x128xf32, #tpu.memory_space<vmem>>, vector<16x128xf32>,
    return
  }
  func.func @transform_0(%arg0: i32, %arg1: i32) -> (i32, i32) {
    %c0_i32 = arith.constant 0 : i32
    %c0_i32_0 = arith.constant 0 : i32
    return %arg0, %c0_i32 : i32, i32
  }
  func.func @transform_1(%arg0: i32, %arg1: i32) -> (i32, i32) {
    %c0_i32 = arith.constant 0 : i32
    %c0_i32_0 = arith.constant 0 : i32
    return %arg1, %c0_i32 : i32, i32
  }
  func.func @transform_2(%arg0: i32, %arg1: i32) -> (i32, i32) {
    %c0_i32 = arith.constant 0 : i32
    %c0_i32_0 = arith.constant 0 : i32
    return %c0_i32, %arg1 : i32, i32
  }
  func.func @transform_3(%arg0: i32, %arg1: i32) -> (i32, i32) {
    %c0_i32 = arith.constant 0 : i32
    return %arg0, %arg1 : i32, i32
  }
}

</mosaic_0001>

<bundles_post_ra>
// kernel: prepare_for_mha.1
= control target key start
LH: loop header
LB: loop body
LE: loop exit
PB: predicated region body
PF: predicated region fallthrough
CT: control target
= control target key end

     0   :  { %s257_s1 = inlined_call_operand.vmem [shape: f32[128,128], index: 1, kind: input, shape index: {}]   ;;  %s258_s0 = inlined_call_operand.vmem [shape: f32[16,128], index: 0, kind: input, shape index: {}]   ;;  %s259_s2 = inlined_call_operand.vmem [shape: f32[1,128], index: 2, kind: input, shape index: {}]   ;;  %s260_s3 = inlined_call_operand.vmem [shape: f32[16,128], index: 3, kind: output, shape index: {}]  }
   0x1   :  { %v31_v0 = vld [vmem:[%s257_s1 + $0x78] sm:$0xff]  ;;  %v30_v1 = vld [vmem:[%s257_s1 + $0x70] sm:$0xff]  ;;  %v29_v2 = vld [vmem:[%s257_s1 + $0x68] sm:$0xff] }
   0x2   :  { %139 = vmatprep.subr.mxu0 %v31_v0  ;;  %v14_v3 = vld [vmem:[%s258_s0] sm:$0xff]  ;;  %v27_v5 = vld [vmem:[%s257_s1 + $0x58] sm:$0xff]  ;;  %v26_v6 = vld [vmem:[%s257_s1 + $0x50] sm:$0xff] }
   0x3   :  { %140 = vmatpush3.xpose.msra.mxu0 %v31_v0  ;;  %171 = vmatprep.mubr.f32.mxu0 %v14_v3  ;;  %v28_v4 = vld [vmem:[%s257_s1 + $0x60] sm:$0xff]  ;;  %v25_v7 = vld [vmem:[%s257_s1 + $0x48] sm:$0xff]  ;;  %v23_v9 = vld [vmem:[%s257_s1 + $0x38] sm:$0xff] }
   0x4   :  { %141 = vmatprep.subr.mxu0 %v30_v1  ;;  %v24_v8 = vld [vmem:[%s257_s1 + $0x40] sm:$0xff]  ;;  %v22_v10 = vld [vmem:[%s257_s1 + $0x30] sm:$0xff]  ;;  %v21_v11 = vld [vmem:[%s257_s1 + $0x28] sm:$0xff] }
   0x5   :  { %v20_v12 = vld [vmem:[%s257_s1 + $0x20] sm:$0xff]  ;;  %v19_v13 = vld [vmem:[%s257_s1 + $0x18] sm:$0xff]  ;;  %v18_v14 = vld [vmem:[%s257_s1 + $0x10] sm:$0xff] }
   0x6   :  { %v17_v15 = vld [vmem:[%s257_s1 + $0x8] sm:$0xff]  ;;  %v16_v16 = vld [vmem:[%s257_s1] sm:$0xff] }
   0x7   :  { %142 = vmatpush3.xpose.msra.mxu0 %v30_v1  ;;  %v15_v17 = vld [vmem:[%s258_s0 + $0x8] sm:$0xff]  ;;  %v120_v18 = vld [vmem:[%s259_s2] ss:$0 sm:$0xff] }
   0x8   :  { %143 = vmatprep.subr.mxu0 %v29_v2 }
   0xb   :  { %144 = vmatpush3.xpose.msra.mxu0 %v29_v2 }
   0xc   :  { %145 = vmatprep.subr.mxu0 %v28_v4 }
   0xf   :  { %146 = vmatpush3.xpose.msra.mxu0 %v28_v4 }
  0x10   :  { %147 = vmatprep.subr.mxu0 %v27_v5 }
  0x13   :  { %148 = vmatpush3.xpose.msra.mxu0 %v27_v5 }
  0x14   :  { %149 = vmatprep.subr.mxu0 %v26_v6 }
  0x17   :  { %150 = vmatpush3.xpose.msra.mxu0 %v26_v6 }
  0x18   :  { %151 = vmatprep.subr.mxu0 %v25_v7 }
  0x1b   :  { %152 = vmatpush3.xpose.msra.mxu0 %v25_v7 }
  0x1c   :  { %153 = vmatprep.subr.mxu0 %v24_v8 }
  0x1f   :  { %154 = vmatpush3.xpose.msra.mxu0 %v24_v8 }
  0x20   :  { %155 = vmatprep.subr.mxu0 %v23_v9 }
  0x23   :  { %156 = vmatpush3.xpose.msra.mxu0 %v23_v9 }
  0x24   :  { %157 = vmatprep.subr.mxu0 %v22_v10 }
  0x27   :  { %158 = vmatpush3.xpose.msra.mxu0 %v22_v10 }
  0x28   :  { %159 = vmatprep.subr.mxu0 %v21_v11 }
  0x2b   :  { %160 = vmatpush3.xpose.msra.mxu0 %v21_v11 }
  0x2c   :  { %161 = vmatprep.subr.mxu0 %v20_v12 }
  0x2f   :  { %162 = vmatpush3.xpose.msra.mxu0 %v20_v12 }
  0x30   :  { %163 = vmatprep.subr.mxu0 %v19_v13 }
  0x33   :  { %164 = vmatpush3.xpose.msra.mxu0 %v19_v13 }
  0x34   :  { %165 = vmatprep.subr.mxu0 %v18_v14 }
  0x37   :  { %166 = vmatpush3.xpose.msra.mxu0 %v18_v14 }
  0x38   :  { %167 = vmatprep.subr.mxu0 %v17_v15 }
  0x3b   :  { %168 = vmatpush3.xpose.msra.mxu0 %v17_v15 }
  0x3c   :  { %169 = vmatprep.subr.mxu0 %v16_v16 }
  0x3f   :  { %170 = vmatpush3.xpose.msra.mxu0 %v16_v16 }
  0x42   :  { %172 = vmatmul.mubr.f32.vlgmr.msra.gmra.mxu0 %v15_v17 }
 0x102   :  { %v173_v19 = vpop.f32.mrf.mxu0 }
 0x103   :  { %v111_v20 = vadd.f32 %v173_v19, %v120_v18 }
 0x104   :  { %v105_v21 = vpop.f32.mrf.mxu0 }
 0x105   :  { %115 = vst [vmem:[%s260_s3 + $0x8] sm:$0xff] %v111_v20  ;;  %v106_v22 = vadd.f32 %v120_v18, %v105_v21 }
 0x107   :  { %114 = vst [vmem:[%s260_s3] sm:$0xff] %v106_v22 }

</bundles_post_ra>
